<compile_context>
chip_gen: v6e
topology: v6e:2x2x1
jax: 0.10.0
libtpu: 0.0.40
codegen_flags: <defaults>
</compile_context>

<pallas_src>
import functools

import jax
import jax.numpy as jnp
from jax.experimental import pallas as pl
from jax.experimental.pallas import tpu as pltpu

EPS = 1e-5


def _round_up(a, b):
    return (a + b - 1) // b * b


def _fused_kernel(x_ref, w_ref, gamma_ref, beta_ref, o_ref,
                  sum_ref, sq_ref, scale_ref, bias_ref,
                  *, nb, h_pad, inv_count):
    s = pl.program_id(0)   # sweep: 0 = statistics, 1 = normalize + write
    i = pl.program_id(1)   # image-block index

    @pl.when((s == 0) & (i == 0))
    def _init():
        sum_ref[...] = jnp.zeros_like(sum_ref)
        sq_ref[...] = jnp.zeros_like(sq_ref)

    # Conv2d(2->C, kernel=(1,W)) == one (tm, 2W) @ (2W, C) matmul, f32 accumulation on the MXU.
    y = jnp.dot(x_ref[...], w_ref[...], preferred_element_type=jnp.float32)

    @pl.when(s == 0)
    def _stats():
        # Zero-padded rows contribute exactly 0; inv_count uses the true N*H.
        # Accumulation stays in f32 even though the stored matmul inputs are bf16.
        sum_ref[...] += jnp.sum(y, axis=0, keepdims=True)
        sq_ref[...] += jnp.sum(y * y, axis=0, keepdims=True)

    @pl.when((s == 1) & (i == 0))
    def _finalize_stats():
        # Fold BatchNorm into y * scale + bias.
        # TODO(synk): single-pass variance (E[y^2]-E[y]^2) can lose digits when |mean| >> std; a third
        # sweep accumulating sum((y-mean)^2) would match PyTorch's two-pass numerics at +50% x reads.
        mean = sum_ref[...] * inv_count
        var = jnp.maximum(sq_ref[...] * inv_count - mean * mean, 0.0)
        inv_std = jax.lax.rsqrt(var + EPS)
        scale_ref[...] = gamma_ref[...] * inv_std
        bias_ref[...] = beta_ref[...] - mean * gamma_ref[...] * inv_std

    @pl.when(s == 1)
    def _write():
        c = o_ref.shape[1]
        o = jnp.maximum(y * scale_ref[...] + bias_ref[...], 0.0)          # (tm, C)
        # Transpose (tm, C) -> (C, tm) with an exact identity matmul (MXU) so the output is written
        # directly in (N, C, H) layout and the wrapper needs no full-output XLA transpose.
        rows = jax.lax.broadcasted_iota(jnp.int32, (c, c), 0)
        cols = jax.lax.broadcasted_iota(jnp.int32, (c, c), 1)
        eye = (rows == cols).astype(jnp.float32)
        ot = jax.lax.dot_general(eye, o, (((1,), (1,)), ((), ())),
                                 preferred_element_type=jnp.float32)       # (C, tm)
        for j in range(nb):   # static unroll: one image slab per write
            o_ref[j, :, :] = ot[:, j * h_pad:(j + 1) * h_pad]


def width_reduction(x, conv_weight, gamma, beta, *, target_rows=2048):
    """
    x           : (N, 2, H, W)  float32, NCHW
    conv_weight : (C, 2, 1, W)  float32, PyTorch Conv2d weight layout
    gamma, beta : (C,)          BatchNorm affine params
    returns     : (N, C, H, 1)  float32, NCHW
    """
    N, Cin, H, W = x.shape
    C = conv_weight.shape[0]
    assert Cin == 2 and conv_weight.shape == (C, 2, 1, W)

    h_pad = _round_up(H, 16)            # bf16 sublane packing for the (tm, 2W) x blocks
    two_w = 2 * W

    # nb images per tile: divides N exactly (no batch padding); tile rows nb*h_pad capped ~target_rows.
    nb = max(1, min(N, max(1, target_rows // h_pad)))
    nb = min(nb, 64)                    # bound the static unroll of per-image output writes
    while N % nb:
        nb -= 1
    n_tiles = N // nb
    tm = nb * h_pad

    # Wrapper-side layout: concat the two channel planes along K (no 128-padding of W or C),
    # zero-pad H rows (contribute 0 to BN sums), cast matmul inputs to bf16 (halves x HBM reads).
    x_cat = jnp.concatenate([x[:, 0, :, :], x[:, 1, :, :]], axis=-1)       # (N, H, 2W)
    if h_pad != H:
        # TODO(synk): for H % 16 != 0 the final [:, :, :H] slice costs one extra output copy.
        x_cat = jnp.pad(x_cat, ((0, 0), (0, h_pad - H), (0, 0)))
    x_cat = x_cat.reshape(N * h_pad, two_w).astype(jnp.bfloat16)

    w_cat = jnp.concatenate([conv_weight[:, 0, 0, :], conv_weight[:, 1, 0, :]],
                            axis=-1).T.astype(jnp.bfloat16)                # (2W, C)
    gamma2 = gamma.astype(jnp.float32).reshape(1, C)
    beta2 = beta.astype(jnp.float32).reshape(1, C)

    inv_count = 1.0 / float(N * H)      # true per-channel element count (padded rows are zero)

    # VMEM budget: double-buffered blocks + live values, generation-aware cap (v5e/v6e 128MiB, v7x 64MiB).
    need = (2 * tm * two_w * 2          # x blocks (bf16), double-buffered
            + 2 * two_w * C * 2         # weights (bf16); tiny, so no pl.Buffered(1) needed
            + 4 * C * 4                 # gamma, beta blocks
            + 2 * nb * C * h_pad * 4    # output block (f32)
            + 4 * C * 4                 # scratch accumulators
            + 4 * tm * C * 4            # live y / o / ot values
            + C * C * 4)                # identity matrix
    try:
        phys_vmem = int(getattr(pltpu.get_tpu_info(), "vmem_capacity_bytes", 64 << 20))
    except Exception:
        phys_vmem = 64 << 20            # conservative (v7x per-core VMEM)
    cap = max(phys_vmem - (8 << 20), 32 << 20)
    vmem_limit = int(min(max(2 * need + (8 << 20), 32 << 20), cap))

    kernel = functools.partial(_fused_kernel, nb=nb, h_pad=h_pad, inv_count=inv_count)

    out = pl.pallas_call(
        kernel,
        out_shape=jax.ShapeDtypeStruct((N, C, h_pad), jnp.float32),
        grid_spec=pltpu.PrefetchScalarGridSpec(
            num_scalar_prefetch=0,
            grid=(2, n_tiles),                                     # (sweep, image-block)
            in_specs=[
                pl.BlockSpec((tm, two_w), lambda s, i: (i, 0)),    # x tiles (re-read in sweep 1)
                pl.BlockSpec((two_w, C), lambda s, i: (0, 0)),     # weights, resident
                pl.BlockSpec((1, C), lambda s, i: (0, 0)),         # gamma, resident
                pl.BlockSpec((1, C), lambda s, i: (0, 0)),         # beta, resident
            ],
            # i*s pins the (never-written) output block to index 0 during sweep 0 so no garbage
            # write-back happens; sweep 1 walks the real output blocks.
            out_specs=pl.BlockSpec((nb, C, h_pad), lambda s, i: (i * s, 0, 0)),
            scratch_shapes=[
                pltpu.VMEM((1, C), jnp.float32),   # running sum
                pltpu.VMEM((1, C), jnp.float32),   # running sum of squares
                pltpu.VMEM((1, C), jnp.float32),   # folded BN scale
                pltpu.VMEM((1, C), jnp.float32),   # folded BN bias
            ],
        ),
        compiler_params=pltpu.CompilerParams(
            # Both axes MUST be sequential: sweep 1 depends on stats from ALL sweep-0 tiles.
            dimension_semantics=("arbitrary", "arbitrary"),
            vmem_limit_bytes=vmem_limit,
        ),
    )(x_cat, w_cat, gamma2, beta2)

    if h_pad != H:
        out = out[:, :, :H]
    return out[..., None]    # (N, C, H, 1) NCHW, matching the PyTorch module


def _reference(x, conv_weight, gamma, beta):
    """Pure-JAX reference of the PyTorch forward (f32)."""
    N, Cin, H, W = x.shape
    C = conv_weight.shape[0]
    y = jnp.einsum('nihw,ciow->nch', x, conv_weight,
                   precision=jax.lax.Precision.HIGHEST)
    y = y[..., None]                                  # (N, C, H, 1)
    mean = jnp.mean(y, axis=(0, 2, 3), keepdims=True)
    var = jnp.mean((y - mean) ** 2, axis=(0, 2, 3), keepdims=True)
    y = (y - mean) / jnp.sqrt(var + EPS)
    y = y * gamma.reshape(1, C, 1, 1) + beta.reshape(1, C, 1, 1)
    return jnp.maximum(y, 0.0)


if __name__ == "__main__":
    key = jax.random.PRNGKey(0)
    k_x, k_w, k_g, k_b = jax.random.split(key, 4)

    # Small shapes consistent with the module: in_channels=2 fixed, in_width=W.
    N, H, W = 2, 16, 16
    C = 32  # out_channels

    x = jax.random.normal(k_x, (N, 2, H, W), dtype=jnp.float32)
    conv_weight = jax.random.normal(k_w, (C, 2, 1, W), dtype=jnp.float32) * 0.1
    gamma = jax.random.normal(k_g, (C,), dtype=jnp.float32) * 0.1 + 1.0
    beta = jax.random.normal(k_b, (C,), dtype=jnp.float32) * 0.1

    out = jax.jit(width_reduction)(x, conv_weight, gamma, beta)
    out = jax.block_until_ready(out)
    assert out.shape == (N, C, H, 1), out.shape

    # Loose check against the exact-semantics f32 reference (allows bf16 matmul-input rounding).
    ref_f32 = _reference(x, conv_weight, gamma, beta)
    assert jnp.allclose(out, ref_f32, atol=1e-1, rtol=1e-1), \
        float(jnp.max(jnp.abs(out - ref_f32)))

    # Tight check against a reference using the same bf16-quantized matmul inputs.
    xq = x.astype(jnp.bfloat16).astype(jnp.float32)
    wq = conv_weight.astype(jnp.bfloat16).astype(jnp.float32)
    ref_bf16 = _reference(xq, wq, gamma, beta)
    assert jnp.allclose(out, ref_bf16, atol=2e-3, rtol=2e-3), \
        float(jnp.max(jnp.abs(out - ref_bf16)))

    print("KERNEL_OK")
</pallas_src>

<mosaic_0001>
module attributes {stable_mosaic.version = 11 : i64} {
  func.func @_fused_kernel(%arg0: i32, %arg1: i32, %arg2: memref<32x32xbf16, #tpu.memory_space<vmem>>, %arg3: memref<32x32xbf16, #tpu.memory_space<vmem>>, %arg4: memref<1x32xf32, #tpu.memory_space<vmem>>, %arg5: memref<1x32xf32, #tpu.memory_space<vmem>>, %arg6: memref<2x32x16xf32, #tpu.memory_space<vmem>>, %arg7: memref<1x32xf32, #tpu.memory_space<vmem>>, %arg8: memref<1x32xf32, #tpu.memory_space<vmem>>, %arg9: memref<1x32xf32, #tpu.memory_space<vmem>>, %arg10: memref<1x32xf32, #tpu.memory_space<vmem>>) attributes {dimension_semantics = [#tpu.dimension_semantics<arbitrary>, #tpu.dimension_semantics<arbitrary>], iteration_bounds = array<i64: 2, 1>, scalar_prefetch = 0 : i64, scratch_operands = 4 : i64, tpu.core_type = #tpu.core_type<tc>, window_params = [{transform_indices = @transform_0, window_bounds = array<i64: 32, 32>}, {pipeline_mode = #tpu.pipeline_mode<synchronous>, transform_indices = @transform_1, window_bounds = array<i64: 32, 32>}, {pipeline_mode = #tpu.pipeline_mode<synchronous>, transform_indices = @transform_2, window_bounds = array<i64: 1, 32>}, {pipeline_mode = #tpu.pipeline_mode<synchronous>, transform_indices = @transform_3, window_bounds = array<i64: 1, 32>}, {transform_indices = @transform_4, window_bounds = array<i64: 2, 32, 16>}]} {
    %c0_i32 = arith.constant 0 : i32
    %0 = arith.cmpi eq, %arg0, %c0_i32 : i32
    %c0_i32_0 = arith.constant 0 : i32
    %1 = arith.cmpi eq, %arg1, %c0_i32_0 : i32
    %2 = arith.andi %0, %1 : i1
    %3 = arith.extui %2 : i1 to i32
    %c0_i32_1 = arith.constant 0 : i32
    %4 = arith.cmpi ne, %3, %c0_i32_1 : i32
    scf.if %4 {
      %cst_11 = arith.constant 0.000000e+00 : f32
      %19 = vector.broadcast %cst_11 : f32 to vector<1x32xf32>
      %c0_12 = arith.constant 0 : index
      %c0_13 = arith.constant 0 : index
      %20 = vector.load %arg7[%c0_12, %c0_13] : memref<1x32xf32, #tpu.memory_space<vmem>>, vector<1x32xf32>
      tpu.vector_store %arg7[%c0_12, %c0_13], %19 {strides = array<i32>} : memref<1x32xf32, #tpu.memory_space<vmem>>, vector<1x32xf32>,
      %cst_14 = arith.constant 0.000000e+00 : f32
      %21 = vector.broadcast %cst_14 : f32 to vector<1x32xf32>
      %c0_15 = arith.constant 0 : index
      %c0_16 = arith.constant 0 : index
      %22 = vector.load %arg8[%c0_15, %c0_16] : memref<1x32xf32, #tpu.memory_space<vmem>>, vector<1x32xf32>
      tpu.vector_store %arg8[%c0_15, %c0_16], %21 {strides = array<i32>} : memref<1x32xf32, #tpu.memory_space<vmem>>, vector<1x32xf32>,
    } else {
    }
    %c0 = arith.constant 0 : index
    %c0_2 = arith.constant 0 : index
    %5 = vector.load %arg2[%c0, %c0_2] : memref<32x32xbf16, #tpu.memory_space<vmem>>, vector<32x32xbf16>
    %c0_3 = arith.constant 0 : index
    %c0_4 = arith.constant 0 : index
    %6 = vector.load %arg3[%c0_3, %c0_4] : memref<32x32xbf16, #tpu.memory_space<vmem>>, vector<32x32xbf16>
    %cst = arith.constant dense<0.000000e+00> : vector<32x32xf32>
    %7 = tpu.matmul %5, %6, %cst {dimension_numbers = #tpu.dot_dimension_numbers<[1], [0], [0], [1], [0, 0, 1, 1], [], []>} : vector<32x32xbf16>, vector<32x32xbf16>, vector<32x32xf32> -> vector<32x32xf32>
    %c0_i32_5 = arith.constant 0 : i32
    %8 = arith.cmpi eq, %arg0, %c0_i32_5 : i32
    %9 = arith.extui %8 : i1 to i32
    %c0_i32_6 = arith.constant 0 : i32
    %10 = arith.cmpi ne, %9, %c0_i32_6 : i32
    scf.if %10 {
      %c0_11 = arith.constant 0 : index
      %c0_12 = arith.constant 0 : index
      %19 = vector.load %arg7[%c0_11, %c0_12] : memref<1x32xf32, #tpu.memory_space<vmem>>, vector<1x32xf32>
      %cst_13 = arith.constant dense<0.000000e+00> : vector<32xf32>
      %20 = vector.multi_reduction <add>, %7, %cst_13 [0] : vector<32x32xf32> to vector<32xf32>
      %21 = vector.shape_cast %20 : vector<32xf32> to vector<1x32xf32>
      %22 = arith.addf %19, %21 : vector<1x32xf32>
      %c0_14 = arith.constant 0 : index
      %c0_15 = arith.constant 0 : index
      %23 = vector.load %arg7[%c0_14, %c0_15] : memref<1x32xf32, #tpu.memory_space<vmem>>, vector<1x32xf32>
      tpu.vector_store %arg7[%c0_14, %c0_15], %22 {strides = array<i32>} : memref<1x32xf32, #tpu.memory_space<vmem>>, vector<1x32xf32>,
      %c0_16 = arith.constant 0 : index
      %c0_17 = arith.constant 0 : index
      %24 = vector.load %arg8[%c0_16, %c0_17] : memref<1x32xf32, #tpu.memory_space<vmem>>, vector<1x32xf32>
      %25 = arith.mulf %7, %7 : vector<32x32xf32>
      %cst_18 = arith.constant dense<0.000000e+00> : vector<32xf32>
      %26 = vector.multi_reduction <add>, %25, %cst_18 [0] : vector<32x32xf32> to vector<32xf32>
      %27 = vector.shape_cast %26 : vector<32xf32> to vector<1x32xf32>
      %28 = arith.addf %24, %27 : vector<1x32xf32>
      %c0_19 = arith.constant 0 : index
      %c0_20 = arith.constant 0 : index
      %29 = vector.load %arg8[%c0_19, %c0_20] : memref<1x32xf32, #tpu.memory_space<vmem>>, vector<1x32xf32>
      tpu.vector_store %arg8[%c0_19, %c0_20], %28 {strides = array<i32>} : memref<1x32xf32, #tpu.memory_space<vmem>>, vector<1x32xf32>,
    } else {
    }
    %c1_i32 = arith.constant 1 : i32
    %11 = arith.cmpi eq, %arg0, %c1_i32 : i32
    %c0_i32_7 = arith.constant 0 : i32
    %12 = arith.cmpi eq, %arg1, %c0_i32_7 : i32
    %13 = arith.andi %11, %12 : i1
    %14 = arith.extui %13 : i1 to i32
    %c0_i32_8 = arith.constant 0 : i32
    %15 = arith.cmpi ne, %14, %c0_i32_8 : i32
    scf.if %15 {
      %c0_11 = arith.constant 0 : index
      %c0_12 = arith.constant 0 : index
      %19 = vector.load %arg7[%c0_11, %c0_12] : memref<1x32xf32, #tpu.memory_space<vmem>>, vector<1x32xf32>
      %cst_13 = arith.constant 3.125000e-02 : f32
      %20 = vector.broadcast %cst_13 : f32 to vector<1x32xf32>
      %21 = arith.mulf %19, %20 : vector<1x32xf32>
      %c0_14 = arith.constant 0 : index
      %c0_15 = arith.constant 0 : index
      %22 = vector.load %arg8[%c0_14, %c0_15] : memref<1x32xf32, #tpu.memory_space<vmem>>, vector<1x32xf32>
      %cst_16 = arith.constant 3.125000e-02 : f32
      %23 = vector.broadcast %cst_16 : f32 to vector<1x32xf32>
      %24 = arith.mulf %22, %23 : vector<1x32xf32>
      %25 = arith.mulf %21, %21 : vector<1x32xf32>
      %26 = arith.subf %24, %25 : vector<1x32xf32>
      %cst_17 = arith.constant 0.000000e+00 : f32
      %27 = vector.broadcast %cst_17 : f32 to vector<1x32xf32>
      %28 = arith.maximumf %26, %27 : vector<1x32xf32>
      %cst_18 = arith.constant 9.99999974E-6 : f32
      %29 = vector.broadcast %cst_18 : f32 to vector<1x32xf32>
      %30 = arith.addf %28, %29 : vector<1x32xf32>
      %31 = math.rsqrt %30 : vector<1x32xf32>
      %c0_19 = arith.constant 0 : index
      %c0_20 = arith.constant 0 : index
      %32 = vector.load %arg4[%c0_19, %c0_20] : memref<1x32xf32, #tpu.memory_space<vmem>>, vector<1x32xf32>
      %33 = arith.mulf %32, %31 : vector<1x32xf32>
      %c0_21 = arith.constant 0 : index
      %c0_22 = arith.constant 0 : index
      %34 = vector.load %arg9[%c0_21, %c0_22] : memref<1x32xf32, #tpu.memory_space<vmem>>, vector<1x32xf32>
      tpu.vector_store %arg9[%c0_21, %c0_22], %33 {strides = array<i32>} : memref<1x32xf32, #tpu.memory_space<vmem>>, vector<1x32xf32>,
      %c0_23 = arith.constant 0 : index
      %c0_24 = arith.constant 0 : index
      %35 = vector.load %arg5[%c0_23, %c0_24] : memref<1x32xf32, #tpu.memory_space<vmem>>, vector<1x32xf32>
      %c0_25 = arith.constant 0 : index
      %c0_26 = arith.constant 0 : index
      %36 = vector.load %arg4[%c0_25, %c0_26] : memref<1x32xf32, #tpu.memory_space<vmem>>, vector<1x32xf32>
      %37 = arith.mulf %21, %36 : vector<1x32xf32>
      %38 = arith.mulf %37, %31 : vector<1x32xf32>
      %39 = arith.subf %35, %38 : vector<1x32xf32>
      %c0_27 = arith.constant 0 : index
      %c0_28 = arith.constant 0 : index
      %40 = vector.load %arg10[%c0_27, %c0_28] : memref<1x32xf32, #tpu.memory_space<vmem>>, vector<1x32xf32>
      tpu.vector_store %arg10[%c0_27, %c0_28], %39 {strides = array<i32>} : memref<1x32xf32, #tpu.memory_space<vmem>>, vector<1x32xf32>,
    } else {
    }
    %c1_i32_9 = arith.constant 1 : i32
    %16 = arith.cmpi eq, %arg0, %c1_i32_9 : i32
    %17 = arith.extui %16 : i1 to i32
    %c0_i32_10 = arith.constant 0 : i32
    %18 = arith.cmpi ne, %17, %c0_i32_10 : i32
    scf.if %18 {
      %c0_11 = arith.constant 0 : index
      %c0_12 = arith.constant 0 : index
      %19 = vector.load %arg9[%c0_11, %c0_12] : memref<1x32xf32, #tpu.memory_space<vmem>>, vector<1x32xf32>
      %20 = vector.broadcast %19 : vector<1x32xf32> to vector<32x32xf32>
      %21 = arith.mulf %7, %20 : vector<32x32xf32>
      %c0_13 = arith.constant 0 : index
      %c0_14 = arith.constant 0 : index
      %22 = vector.load %arg10[%c0_13, %c0_14] : memref<1x32xf32, #tpu.memory_space<vmem>>, vector<1x32xf32>
      %23 = vector.broadcast %22 : vector<1x32xf32> to vector<32x32xf32>
      %24 = arith.addf %21, %23 : vector<32x32xf32>
      %cst_15 = arith.constant 0.000000e+00 : f32
      %25 = vector.broadcast %cst_15 : f32 to vector<32x32xf32>
      %26 = arith.maximumf %24, %25 : vector<32x32xf32>
      %27 = tpu.iota {dimensions = array<i32: 0>} : vector<32x32xi32>
      %28 = tpu.iota {dimensions = array<i32: 1>} : vector<32x32xi32>
      %29 = arith.cmpi eq, %27, %28 : vector<32x32xi32>
      %30 = arith.extui %29 : vector<32x32xi1> to vector<32x32xi32>
      %31 = arith.sitofp %30 : vector<32x32xi32> to vector<32x32xf32>
      %cst_16 = arith.constant dense<0.000000e+00> : vector<32x32xf32>
      %32 = tpu.matmul %31, %26, %cst_16 {dimension_numbers = #tpu.dot_dimension_numbers<[1], [1], [0], [0], [0, 0, 1, 0], [], []>} : vector<32x32xf32>, vector<32x32xf32>, vector<32x32xf32> -> vector<32x32xf32>
      %33 = vector.extract_strided_slice %32 {offsets = [0, 0], sizes = [32, 16], strides = [1, 1]} : vector<32x32xf32> to vector<32x16xf32>
      %c0_17 = arith.constant 0 : index
      %c0_18 = arith.constant 0 : index
      %c0_19 = arith.constant 0 : index
      %34 = vector.load %arg6[%c0_17, %c0_18, %c0_19] : memref<2x32x16xf32, #tpu.memory_space<vmem>>, vector<1x32x16xf32>
      %35 = vector.shape_cast %34 : vector<1x32x16xf32> to vector<32x16xf32>
      %36 = vector.shape_cast %33 : vector<32x16xf32> to vector<1x32x16xf32>
      tpu.vector_store %arg6[%c0_17, %c0_18, %c0_19], %36 {strides = array<i32>} : memref<2x32x16xf32, #tpu.memory_space<vmem>>, vector<1x32x16xf32>,
      %37 = vector.extract_strided_slice %32 {offsets = [0, 16], sizes = [32, 16], strides = [1, 1]} : vector<32x32xf32> to vector<32x16xf32>
      %c1 = arith.constant 1 : index
      %c0_20 = arith.constant 0 : index
      %c0_21 = arith.constant 0 : index
      %38 = vector.load %arg6[%c1, %c0_20, %c0_21] : memref<2x32x16xf32, #tpu.memory_space<vmem>>, vector<1x32x16xf32>
      %39 = vector.shape_cast %38 : vector<1x32x16xf32> to vector<32x16xf32>
      %40 = vector.shape_cast %37 : vector<32x16xf32> to vector<1x32x16xf32>
      tpu.vector_store %arg6[%c1, %c0_20, %c0_21], %40 {strides = array<i32>} : memref<2x32x16xf32, #tpu.memory_space<vmem>>, vector<1x32x16xf32>,
    } else {
    }
    return
  }
  func.func @transform_0(%arg0: i32, %arg1: i32) -> (i32, i32) {
    %c0_i32 = arith.constant 0 : i32
    %c0_i32_0 = arith.constant 0 : i32
    return %arg1, %c0_i32 : i32, i32
  }
  func.func @transform_1(%arg0: i32, %arg1: i32) -> (i32, i32) {
    %c0_i32 = arith.constant 0 : i32
    %c0_i32_0 = arith.constant 0 : i32
    %c0_i32_1 = arith.constant 0 : i32
    return %c0_i32, %c0_i32_0 : i32, i32
  }
  func.func @transform_2(%arg0: i32, %arg1: i32) -> (i32, i32) {
    %c0_i32 = arith.constant 0 : i32
    %c0_i32_0 = arith.constant 0 : i32
    %c0_i32_1 = arith.constant 0 : i32
    return %c0_i32, %c0_i32_0 : i32, i32
  }
  func.func @transform_3(%arg0: i32, %arg1: i32) -> (i32, i32) {
    %c0_i32 = arith.constant 0 : i32
    %c0_i32_0 = arith.constant 0 : i32
    %c0_i32_1 = arith.constant 0 : i32
    return %c0_i32, %c0_i32_0 : i32, i32
  }
  func.func @transform_4(%arg0: i32, %arg1: i32) -> (i32, i32, i32) {
    %0 = arith.muli %arg1, %arg0 : i32
    %c0_i32 = arith.constant 0 : i32
    %c0_i32_0 = arith.constant 0 : i32
    %c0_i32_1 = arith.constant 0 : i32
    return %0, %c0_i32, %c0_i32_0 : i32, i32, i32
  }
}

</mosaic_0001>

<bundles_post_ra>
// kernel: width_reduction.1
= control target key start
LH: loop header
LB: loop body
LE: loop exit
PB: predicated region body
PF: predicated region fallthrough
CT: control target
= control target key end

     0   :  { %s802_s15 = smov 0   ;;  %s804_s16 = smov 0   ;;  %s942_s0 = inlined_call_operand.vmem [shape: bf16[32,32], index: 0, kind: input, shape index: {}]   ;;  %s943_s1 = inlined_call_operand.vmem [shape: bf16[32,32], index: 1, kind: input, shape index: {}]   ;;  %s944_s2 = inlined_call_operand.vmem [shape: f32[1,32], index: 2, kind: input, shape index: {}]   ;;  %s945_s3 = inlined_call_operand.vmem [shape: f32[1,32], index: 3, kind: input, shape index: {}]   ;;  %s946_s4 = inlined_call_operand.vmem [shape: f32[2,32,16], index: 4, kind: output, shape index: {}]  }
   0x1   :  { %s806_s17 = smov 0  }
   0x2 LB: > { %s26_s18 = sadd.s32 1, %s768_s16  ;;  %p640_p0 = scmp.ge.s32.totalorder %s772_s17, 1  ;;  %s772_s17 = sphi %s806_s17, %s14_s17   ;;  %s768_s16 = sphi %s804_s16, %s948_s16   ;;  %s764_s15 = sphi %s802_s15, %s947_s15  }
   0x3   : > { %p28_p1 = scmp.ge.s32.totalorder %s26_s18, 2  ;;  %p177_p2 = scmp.lt.s32.totalorder %s772_s17, 3 }
   0x5   : > { %s950_s18 = smov (%p28_p1, %s26_s18), 0  ;;  %p178_p3 = pnand %p640_p0, %p177_p2 }
   0x6   : > { %p221_p4 = scmp.eq.s32.totalorder (!%p178_p3), %s764_s15, 0 }
   0x7   : > { %181 = sbr.rel (%p178_p3) target bundleno = 629 (0x275), region = 36 }
   0xc   : > { %226 = sbr.rel (!%p221_p4) target bundleno = 17 (0x11), region = 40  ;;  %vm227_vm0 = vcmask (%p221_p4), 253952   ;;  %v774_v0 = vmov (%p221_p4), 0.0  }
   0xd   : > { %228 = vst.msk [vmem:[#allocation2] sm:$0x1] (%p221_p4), %vm227_vm0, %v774_v0  ;;  %229 = vst.msk [vmem:[#allocation3] sm:$0x1] (%p221_p4), %vm227_vm0, %v774_v0 }
  0x11 PF: > { %v744_v1 = vld [vmem:[%s943_s1 + $0x8] sm:$0xff]   ;;  %v745_v2 = vld [vmem:[%s943_s1] sm:$0xff]   ;;  %vm260_vm1 = vcmask 261120   ;;  %p648_p5 = scmp.ne.s32.totalorder %s764_s15, 0 }
  0x12   : > { %687 = vmatprep.subr.bf16.mxu0 %v744_v1  ;;  %v746_v3 = vld [vmem:[%s942_s0] sm:$0xff]   ;;  %v747_v4 = vld [vmem:[%s942_s0 + $0x8] sm:$0xff]  }
  0x13   : > { %688 = vmatpush3.bf16.msra.mxu0 %v744_v1  ;;  %691 = vmatprep.mubr.msk.bf16.mxu0 %vm260_vm1, %v746_v3 }
  0x14   : > { %689 = vmatprep.subr.bf16.mxu0 %v745_v2 }
  0x17   : > { %690 = vmatpush3.bf16.msra.mxu0 %v745_v2 }
  0x1a   : > { %692 = vmatmul.mubr.msk.bf16.vlgmr.msra.gmra.mxu0 %vm260_vm1, %v747_v4 }
  0xda   : > { %v837_v5 = vpop.f32.mrf.mxu0 }
  0xdc   : > { %v839_v6 = vpop.f32.mrf.mxu0  ;;  %318 = sbr.rel (%p648_p5) target bundleno = 250 (0xfa), region = 44 }
  0xde   : > { %v841_v7 = vpop.f32.mrf.mxu0 }
  0xe0   : > { %v843_v8 = vpop.f32.mrf.mxu0 }
  0xe1   : > { %v320_v9 = vsel %vm260_vm1, %v839_v6, 0.0  ;;  %v321_v10 = vsel %vm260_vm1, %v843_v8, 0.0  ;;  %v323_v11 = vsel %vm260_vm1, %v837_v5, 0.0  ;;  %v337_v13 = vmul.f32 %v839_v6, %v839_v6  ;;  %v319_v35 = vld [vmem:[#allocation2] sm:$0x1] }
  0xe2   : > { %v322_v12 = vadd.f32 %v321_v10, %v320_v9  ;;  %v338_v14 = vmul.f32 %v843_v8, %v843_v8  ;;  %v325_v15 = vsel %vm260_vm1, %v841_v7, 0.0  ;;  %v339_v16 = vmul.f32 %v837_v5, %v837_v5  ;;  %v336_v40 = vld [vmem:[#allocation3] sm:$0x1] }
  0xe3   : > { %v340_v17 = vmul.f32 %v841_v7, %v841_v7  ;;  %v341_v19 = vsel %vm260_vm1, %v337_v13, 0.0  ;;  %vm334_vm2 = vcmask 253952  }
  0xe4   : > { %v324_v18 = vadd.f32 %v323_v11, %v322_v12  ;;  %v342_v20 = vsel %vm260_vm1, %v338_v14, 0.0  ;;  %v344_v22 = vsel %vm260_vm1, %v339_v16, 0.0 }
  0xe5   : > { %v343_v21 = vadd.f32 %v342_v20, %v341_v19  ;;  %v346_v24 = vsel %vm260_vm1, %v340_v17, 0.0 }
  0xe6   : > { %v326_v23 = vadd.f32 %v325_v15, %v324_v18 }
  0xe7   : > { %v345_v25 = vadd.f32 %v344_v22, %v343_v21 }
  0xe8   : > { %v327_v26 = vrot.slane %v326_v23, 4 }
  0xe9   : > { %v347_v27 = vadd.f32 %v346_v24, %v345_v25 }
  0xea   : > { %v328_v28 = vadd.f32 %v327_v26, %v326_v23 }
  0xeb   : > { %v348_v29 = vrot.slane %v347_v27, 4 }
  0xec   : > { %v329_v30 = vrot.slane %v328_v28, 2 }
  0xed   : > { %v349_v31 = vadd.f32 %v348_v29, %v347_v27 }
  0xee   : > { %v330_v32 = vadd.f32 %v329_v30, %v328_v28 }
  0xef   : > { %v350_v33 = vrot.slane %v349_v31, 2 }
  0xf0   : > { %v331_v34 = vrot.slane %v330_v32, 1 }
  0xf1   : > { %v351_v36 = vadd.f32 %v350_v33, %v349_v31 }
  0xf2   : > { %v332_v37 = vadd.f32 %v331_v34, %v330_v32 }
  0xf3   : > { %v352_v38 = vrot.slane %v351_v36, 1 }
  0xf4   : > { %v333_v39 = vadd.f32 %v332_v37, %v319_v35 }
  0xf5   : > { %v353_v41 = vadd.f32 %v352_v38, %v351_v36 }
  0xf6   : > { %335 = vst.msk [vmem:[#allocation2] sm:$0x1] %vm334_vm2, %v333_v39 }
  0xf7   : > { %v354_v42 = vadd.f32 %v353_v41, %v336_v40 }
  0xf9   : > { %355 = vst.msk [vmem:[#allocation3] sm:$0x1] %vm334_vm2, %v354_v42 }
  0xfa PF: > { %p356_p6 = scmp.eq.s32.totalorder %s764_s15, 1 }
  0xfb   : > { %v375_v51 = vld [vmem:[%s944_s2] sm:$0x1] (%p356_p6)  ;;  %vm372_vm3 = vcmask (%p356_p6), 253952  }
  0xfc   : > { %360 = sbr.rel (!%p356_p6) target bundleno = 284 (0x11c), region = 48  ;;  %v370_v53 = vld [vmem:[%s944_s2] sm:$0x1] (%p356_p6) }
  0xfd   : > { %v361_v43 = vld [vmem:[#allocation2] sm:$0x1] (%p356_p6) }
  0xfe   : > { %v362_v45 = vmul.f32 (%p356_p6), 0.03125, %v361_v43  ;;  %v374_v55 = vld [vmem:[%s945_s3] sm:$0x1] (%p356_p6) }
 0x100   : > { %v363_v44 = vld [vmem:[#allocation3] sm:$0x1] (%p356_p6)  ;;  %v365_v47 = vmul.f32 (%p356_p6), %v362_v45, %v362_v45  ;;  %v376_v52 = vmul.f32 (%p356_p6), %v375_v51, %v362_v45 }
 0x101   : > { %v364_v46 = vmul.f32 0.03125, %v363_v44 }
 0x103   : > { %v366_v48 = vsub.f32 %v364_v46, %v365_v47 }
 0x105   : > { %v367_v49 = vmax.f32 %v366_v48, 0.0 }
 0x107   : > { %v368_v50 = vadd.f32 1e-05, %v367_v49 }
 0x109   : > { %748 = vrsqrt.f32 %v368_v50 }
 0x116   : > { %v749_v54 = vpop.eup %748 }
 0x117   : > { %v371_v56 = vmul.f32 %v749_v54, %v370_v53  ;;  %v377_v57 = vmul.f32 %v749_v54, %v376_v52 }
 0x119   : > { %373 = vst.msk [vmem:[#allocation4] sm:$0x1] %vm372_vm3, %v371_v56  ;;  %v378_v58 = vsub.f32 %v374_v55, %v377_v57 }
 0x11b   : > { %379 = vst.msk [vmem:[#allocation5] sm:$0x1] %vm372_vm3, %v378_v58 }
 0x11c PF: > { %p650_p7 = scmp.ne.s32.totalorder %s764_s15, 1 }
 0x11d   : > { %s776_s15 = smov (!%p650_p7), 112  }
 0x11e   : > { %382 = sbr.rel (%p650_p7) target bundleno = 629 (0x275), region = 52 }
 0x123   : > { %v651_v59 = vld [vmem:[#allocation4] ss:$0 sm:$0xff]  ;;  %v652_v60 = vld [vmem:[#allocation5] ss:$0 sm:$0xff]  ;;  %v409_v61 = vlaneseq  ;;  %vm537_vm8 = vcmask 130048  }
 0x124   : > { %v393_v62 = vmul.f32 %v841_v7, %v651_v59  ;;  %v392_v63 = vmul.f32 %v837_v5, %v651_v59  ;;  %v391_v0 = vmul.f32 %v651_v59, %v843_v8  ;;  %v390_v13 = vmul.f32 %v651_v59, %v839_v6 }
 0x125   : > { %v410_v1 = vshrl.u32 %v409_v61, 7  ;;  %v415_v2 = vand.u32 127, %v409_v61  ;;  %v775_v7 = vmov 0.0  }
 0x126   : > { %v404_v3 = vadd.f32 %v652_v60, %v393_v62  ;;  %v403_v4 = vadd.f32 %v652_v60, %v392_v63  ;;  %v402_v12 = vadd.f32 %v652_v60, %v391_v0  ;;  %v401_v15 = vadd.f32 %v652_v60, %v390_v13 }
 0x127   : > { %vm416_vm4 = vcmp.eq.s32.totalorder %v410_v1, %v415_v2  ;;  %v412_v9 = vadd.s32 16, %v410_v1  ;;  %v411_v16 = vadd.s32 8, %v410_v1  ;;  %v413_v17 = vadd.s32 24, %v410_v1 }
 0x128   : > { %v408_v10 = vmax.f32 %v404_v3, 0.0  ;;  %v407_v11 = vmax.f32 %v403_v4, 0.0  ;;  %v653_v5 = vsel %vm416_vm4, 1.0, %v775_v7  ;;  %v406_v8 = vmax.f32 %v402_v12, 0.0 }
 0x129   : > { %vm418_vm5 = vcmp.eq.s32.totalorder %v412_v9, %v415_v2  ;;  %703 = vmatprep.mubr.msk.f32.mxu0 %vm260_vm1, %v653_v5  ;;  %v405_v6 = vmax.f32 %v401_v15, 0.0  ;;  %vm417_vm6 = vcmp.eq.s32.totalorder %v411_v16, %v415_v2  ;;  %vm419_vm7 = vcmp.eq.s32.totalorder %v413_v17, %v415_v2 }
 0x12a   : > { %695 = vmatprep.subr.msk.mxu0 %vm260_vm1, %v408_v10  ;;  %709 = vmatprep.subr.msk.mxu1 %vm260_vm1, %v408_v10  ;;  %v655_v14 = vsel %vm418_vm5, 1.0, %v775_v7  ;;  %v654_v18 = vsel %vm417_vm6, 1.0, %v775_v7  ;;  %v656_v19 = vsel %vm419_vm7, 1.0, %v775_v7 }
 0x12b   : > { %696 = vmatpush3.xpose.msk.msra.mxu0 %vm260_vm1, %v408_v10  ;;  %713 = vmatpush3.xpose.msk.msra.mxu1 %vm260_vm1, %v408_v10 }
 0x12c   : > { %697 = vmatprep.subr.msk.mxu0 %vm260_vm1, %v407_v11  ;;  %710 = vmatprep.subr.msk.mxu1 %vm260_vm1, %v407_v11 }
 0x12d   : > { %706 = vmatprep.mubr.msk.f32.mxu1 %vm260_vm1, %v655_v14 }
 0x12f   : > { %698 = vmatpush3.xpose.msk.msra.mxu0 %vm260_vm1, %v407_v11  ;;  %714 = vmatpush3.xpose.msk.msra.mxu1 %vm260_vm1, %v407_v11 }
 0x130   : > { %699 = vmatprep.subr.msk.mxu0 %vm260_vm1, %v406_v8  ;;  %711 = vmatprep.subr.msk.mxu1 %vm260_vm1, %v406_v8 }
 0x133   : > { %700 = vmatpush3.xpose.msk.msra.mxu0 %vm260_vm1, %v406_v8  ;;  %715 = vmatpush3.xpose.msk.msra.mxu1 %vm260_vm1, %v406_v8 }
 0x134   : > { %701 = vmatprep.subr.msk.mxu0 %vm260_vm1, %v405_v6  ;;  %712 = vmatprep.subr.msk.mxu1 %vm260_vm1, %v405_v6 }
 0x137   : > { %702 = vmatpush3.xpose.msk.msra.mxu0 %vm260_vm1, %v405_v6  ;;  %716 = vmatpush3.xpose.msk.msra.mxu1 %vm260_vm1, %v405_v6 }
 0x13a   : > { %704 = vmatmul.mubr.msk.f32.vlgmr.msra.gmra.mxu0 %vm260_vm1, %v654_v18  ;;  %707 = vmatmul.mubr.msk.f32.vlgmr.msra.gmra.mxu1 %vm260_vm1, %v656_v19 }
 0x1fa   : > { %v705_v20 = vpop.f32.mrf.mxu0  ;;  %v708_v21 = vpop.f32.mrf.mxu1 }
 0x1fb   : > { %539 = vst.msk [vmem:[%s946_s4 + $0x8] sm:$0xff] %vm537_vm8, %v705_v20  ;;  %541 = vst.msk [vmem:[%s946_s4 + $0x18] sm:$0xff] %vm537_vm8, %v708_v21 }
 0x1fc   : > { %v518_v22 = vpop.f32.mrf.mxu0  ;;  %v528_v23 = vpop.f32.mrf.mxu1 }
 0x1fd   : > { %538 = vst.msk [vmem:[%s946_s4] sm:$0xff] %vm537_vm8, %v518_v22  ;;  %540 = vst.msk [vmem:[%s946_s4 + $0x10] sm:$0xff] %vm537_vm8, %v528_v23  ;;  %550 = vrot.lane.b32.xlu1 %v528_v23, %s776_s15  ;;  %546 = vrot.lane.b32.xlu0 %v518_v22, %s776_s15 }
 0x201   : > { %552 = vrot.lane.b32.xlu1 %v708_v21, %s776_s15  ;;  %548 = vrot.lane.b32.xlu0 %v705_v20, %s776_s15 }
 0x26f   : > { %v551_v24 = vpop.permute.xlu1 %550  ;;  %v547_v25 = vpop.permute.xlu0 %546 }
 0x270   : > { %667 = vst.msk [vmem:[%s946_s4 + $0x30] sm:$0xff] %vm537_vm8, %v551_v24  ;;  %665 = vst.msk [vmem:[%s946_s4 + $0x20] sm:$0xff] %vm537_vm8, %v547_v25 }
 0x273   : > { %v553_v26 = vpop.permute.xlu1 %552  ;;  %v549_v27 = vpop.permute.xlu0 %548 }
 0x274   : > { %668 = vst.msk [vmem:[%s946_s4 + $0x38] sm:$0xff] %vm537_vm8, %v553_v26  ;;  %666 = vst.msk [vmem:[%s946_s4 + $0x28] sm:$0xff] %vm537_vm8, %v549_v27 }
 0x275 PF: > { %s14_s17 = sadd.s32 1, %s772_s17   ;;  %s947_s15 = smov %s768_s16 }
 0x276   : > { %p11_p8 = scmp.ge.s32.totalorder %s14_s17, 4   ;;  %s948_s16 = smov %s950_s18 }
 0x278   :  { %13 = sbr.rel (!%p11_p8) target bundleno = 2 (0x2), region = 83 }

</bundles_post_ra>
